<compile_context>
chip_gen: v5e
topology: v5e:2x2
jax: 0.10.0
libtpu: 0.0.40
codegen_flags: <defaults>
</compile_context>

<pallas_src>
import functools

import numpy as np
import jax
import jax.numpy as jnp
from jax import lax
from jax.experimental import pallas as pl
from jax.experimental.pallas import tpu as pltpu

BLOCK_SIZE = 8      # block_size in the reference module (max sequence length)
N_EMBD = 384        # n_embd
HEAD_SIZE = 64      # head_size chosen for this synthetic instantiation
HEAD_PAD = 128      # head dim padded to one full lane tile
# TODO(synk): nn.Dropout(0.2) is identity in eval mode; training-time dropout
# (stochastic masking of the attention weights) is not implemented here.


def head_kernel(x_ref, w_ref, bias_ref, o_ref, *, hp: int):
    # x_ref:    (B*T, C)      f32  activations (cast to bf16 in-kernel)
    # w_ref:    (C, 3*hp)     bf16 fused q|k|v slab, scale folded into q,
    #                              zero-padded to hp=128 lanes per head
    # bias_ref: (B*T, B*T)    f32  additive mask (0 kept / -1e30 masked)
    # o_ref:    (B*T, hp)     bf16 lane-dense padded output
    x = x_ref[...].astype(jnp.bfloat16)

    # Single fused QKV projection on the MXU, f32 accumulation.
    qkv = jnp.dot(x, w_ref[...], preferred_element_type=jnp.float32)  # (n, 3*hp)

    # Lane-aligned 128-wide slices; bf16 operands for the remaining matmuls.
    q = qkv[:, :hp].astype(jnp.bfloat16)
    k = qkv[:, hp:2 * hp].astype(jnp.bfloat16)
    v = qkv[:, 2 * hp:].astype(jnp.bfloat16)

    # Scores for the whole flattened batch; contract the shared head dim
    # directly (no explicit transpose/relayout).  Padded head columns are
    # zero in both q and k, so they contribute nothing.
    wei = lax.dot_general(q, k, (((1,), (1,)), ((), ())),
                          preferred_element_type=jnp.float32)  # (n, n)

    # Precomputed block-diagonal + causal additive bias (finite -1e30 so a
    # row can never become all -inf / NaN).
    wei = wei + bias_ref[...]

    # Numerically stable softmax; approx reciprocal runs on the idle EUP slot.
    wei = wei - jnp.max(wei, axis=-1, keepdims=True)
    p = jnp.exp(wei)
    p = p * pl.reciprocal(jnp.sum(p, axis=-1, keepdims=True), approx=True)

    # PV matmul with bf16 operands, f32 accumulation, bf16 lane-dense store.
    o_ref[...] = jnp.dot(p.astype(jnp.bfloat16), v,
                         preferred_element_type=jnp.float32).astype(o_ref.dtype)


def prepare_head_params(wk, wq, wv, batch, seq, head_pad=HEAD_PAD):
    """One-time host-side prep (do NOT redo per forward call).

    wk/wq/wv: (n_embd, head_size) f32 pre-transposed Linear weights.
    Returns (w_qkv_bf16, bias_f32) ready to feed to head_forward.
    """
    C, H = wk.shape
    assert head_pad >= H

    def pad(w):
        return jnp.pad(w, ((0, 0), (0, head_pad - H)))

    # Fold 1/sqrt(head_size) into the query projection, pad each head to 128
    # lanes, fuse into one (C, 3*128) slab, cast to bf16 once.
    w_qkv = jnp.concatenate(
        [pad(wq * (H ** -0.5)), pad(wk), pad(wv)], axis=1
    ).astype(jnp.bfloat16)

    # Trace-time-constant block-diagonal causal mask as an additive bias.
    n = batch * seq
    r = np.arange(n)[:, None]
    c = np.arange(n)[None, :]
    keep = (r // seq == c // seq) & (c <= r)
    bias = jnp.asarray(np.where(keep, 0.0, -1e30), dtype=jnp.float32)
    return w_qkv, bias


@functools.partial(jax.jit, static_argnames=("head_size",))
def head_forward(x, w_qkv, bias, *, head_size=HEAD_SIZE):
    """x: (B, T, C) f32; w_qkv: (C, 3*128) bf16; bias: (B*T, B*T) f32."""
    B, T, C = x.shape
    hp = w_qkv.shape[1] // 3
    n = B * T

    x2d = x.reshape(n, C)  # free metadata reshape; cast happens in-kernel

    out_pad = pl.pallas_call(
        functools.partial(head_kernel, hp=hp),
        out_shape=jax.ShapeDtypeStruct((n, hp), jnp.bfloat16),
        grid_spec=pltpu.PrefetchScalarGridSpec(
            num_scalar_prefetch=0,
            # Whole problem in one invocation: per-grid-step overhead dwarfs
            # the ~MFLOP of work at these sizes (true on v5e/v6e/v7x alike).
            grid=(1,),
            in_specs=[
                pl.BlockSpec((n, C), lambda i: (0, 0)),
                pl.BlockSpec((C, 3 * hp), lambda i: (0, 0)),
                pl.BlockSpec((n, n), lambda i: (0, 0)),
            ],
            out_specs=pl.BlockSpec((n, hp), lambda i: (0, 0)),
        ),
        compiler_params=pltpu.CompilerParams(
            dimension_semantics=("arbitrary",)),
    )(x2d, w_qkv, bias)

    # Drop the zero-padded head columns and restore (B, T, head_size).
    return out_pad[:, :head_size].reshape(B, T, head_size)


def head_reference(x, wk, wq, wv):
    # Pure-JAX f32 reference of the PyTorch Head.forward (eval mode).
    k = x @ wk
    q = x @ wq
    v = x @ wv
    wei = (q @ jnp.swapaxes(k, -2, -1)) * (wk.shape[-1] ** -0.5)
    T = x.shape[1]
    tril = jnp.tril(jnp.ones((T, T), dtype=bool))
    wei = jnp.where(tril, wei, -jnp.inf)
    wei = jax.nn.softmax(wei, axis=-1)
    return wei @ v


if __name__ == "__main__":
    key = jax.random.PRNGKey(0)
    kx, kk, kq, kv = jax.random.split(key, 4)

    B, T = 2, BLOCK_SIZE
    x = jax.random.normal(kx, (B, T, N_EMBD), dtype=jnp.float32)
    # deterministic "Linear" weights, stored as (n_embd, head_size)
    bound = N_EMBD ** -0.5
    wk = jax.random.uniform(kk, (N_EMBD, HEAD_SIZE), jnp.float32, -bound, bound)
    wq = jax.random.uniform(kq, (N_EMBD, HEAD_SIZE), jnp.float32, -bound, bound)
    wv = jax.random.uniform(kv, (N_EMBD, HEAD_SIZE), jnp.float32, -bound, bound)

    # One-time parameter prep (fused/padded/scale-folded bf16 slab + mask bias).
    w_qkv, bias = prepare_head_params(wk, wq, wv, batch=B, seq=T)
    w_qkv, bias = jax.block_until_ready((w_qkv, bias))

    out = head_forward(x, w_qkv, bias, head_size=HEAD_SIZE)
    jax.block_until_ready(out)

    ref = head_reference(x, wk, wq, wv)
    assert out.shape == (B, T, HEAD_SIZE)
    # Tolerance accounts for bf16 MXU operands / bf16 output (f32 accumulation)
    # and the approximate EUP reciprocal in the softmax.
    assert jnp.allclose(out.astype(jnp.float32), ref, atol=2e-2, rtol=2e-2)
    print("KERNEL_OK")
</pallas_src>

<mosaic_0001>
module attributes {stable_mosaic.version = 11 : i64} {
  func.func @head_kernel(%arg0: i32, %arg1: memref<16x384xf32, #tpu.memory_space<vmem>>, %arg2: memref<384x384xbf16, #tpu.memory_space<vmem>>, %arg3: memref<16x16xf32, #tpu.memory_space<vmem>>, %arg4: memref<16x128xbf16, #tpu.memory_space<vmem>>) attributes {dimension_semantics = [#tpu.dimension_semantics<arbitrary>], iteration_bounds = array<i64: 1>, scalar_prefetch = 0 : i64, scratch_operands = 0 : i64, tpu.core_type = #tpu.core_type<tc>, window_params = [{pipeline_mode = #tpu.pipeline_mode<synchronous>, transform_indices = @transform_0, window_bounds = array<i64: 16, 384>}, {pipeline_mode = #tpu.pipeline_mode<synchronous>, transform_indices = @transform_1, window_bounds = array<i64: 384, 384>}, {pipeline_mode = #tpu.pipeline_mode<synchronous>, transform_indices = @transform_2, window_bounds = array<i64: 16, 16>}, {pipeline_mode = #tpu.pipeline_mode<synchronous>, transform_indices = @transform_3, window_bounds = array<i64: 16, 128>}]} {
    %c0 = arith.constant 0 : index
    %c0_0 = arith.constant 0 : index
    %0 = vector.load %arg1[%c0, %c0_0] : memref<16x384xf32, #tpu.memory_space<vmem>>, vector<16x384xf32>
    %1 = arith.truncf %0 : vector<16x384xf32> to vector<16x384xbf16>
    %c0_1 = arith.constant 0 : index
    %c0_2 = arith.constant 0 : index
    %2 = vector.load %arg2[%c0_1, %c0_2] : memref<384x384xbf16, #tpu.memory_space<vmem>>, vector<384x384xbf16>
    %cst = arith.constant dense<0.000000e+00> : vector<16x384xf32>
    %3 = tpu.matmul %1, %2, %cst {dimension_numbers = #tpu.dot_dimension_numbers<[1], [0], [0], [1], [0, 0, 1, 1], [], []>} : vector<16x384xbf16>, vector<384x384xbf16>, vector<16x384xf32> -> vector<16x384xf32>
    %4 = vector.extract_strided_slice %3 {offsets = [0, 0], sizes = [16, 128], strides = [1, 1]} : vector<16x384xf32> to vector<16x128xf32>
    %5 = arith.truncf %4 : vector<16x128xf32> to vector<16x128xbf16>
    %6 = vector.extract_strided_slice %3 {offsets = [0, 128], sizes = [16, 128], strides = [1, 1]} : vector<16x384xf32> to vector<16x128xf32>
    %7 = arith.truncf %6 : vector<16x128xf32> to vector<16x128xbf16>
    %8 = vector.extract_strided_slice %3 {offsets = [0, 256], sizes = [16, 128], strides = [1, 1]} : vector<16x384xf32> to vector<16x128xf32>
    %9 = arith.truncf %8 : vector<16x128xf32> to vector<16x128xbf16>
    %cst_3 = arith.constant dense<0.000000e+00> : vector<16x16xf32>
    %10 = tpu.matmul %5, %7, %cst_3 {dimension_numbers = #tpu.dot_dimension_numbers<[1], [1], [0], [0], [0, 0, 1, 0], [], []>} : vector<16x128xbf16>, vector<16x128xbf16>, vector<16x16xf32> -> vector<16x16xf32>
    %c0_4 = arith.constant 0 : index
    %c0_5 = arith.constant 0 : index
    %11 = vector.load %arg3[%c0_4, %c0_5] : memref<16x16xf32, #tpu.memory_space<vmem>>, vector<16x16xf32>
    %12 = arith.addf %10, %11 : vector<16x16xf32>
    %cst_6 = arith.constant dense<0xFF800000> : vector<16xf32>
    %13 = vector.multi_reduction <maximumf>, %12, %cst_6 [1] : vector<16x16xf32> to vector<16xf32>
    %14 = vector.shape_cast %13 : vector<16xf32> to vector<16x1xf32>
    %15 = vector.broadcast %14 : vector<16x1xf32> to vector<16x16xf32>
    %16 = arith.subf %12, %15 : vector<16x16xf32>
    %17 = math.exp %16 : vector<16x16xf32>
    %cst_7 = arith.constant dense<0.000000e+00> : vector<16xf32>
    %18 = vector.multi_reduction <add>, %17, %cst_7 [1] : vector<16x16xf32> to vector<16xf32>
    %19 = vector.shape_cast %18 : vector<16xf32> to vector<16x1xf32>
    %20 = tpu.reciprocal %19 {approx = true} : vector<16x1xf32> -> vector<16x1xf32>
    %21 = vector.broadcast %20 : vector<16x1xf32> to vector<16x16xf32>
    %22 = arith.mulf %17, %21 : vector<16x16xf32>
    %23 = arith.truncf %22 : vector<16x16xf32> to vector<16x16xbf16>
    %cst_8 = arith.constant dense<0.000000e+00> : vector<16x128xf32>
    %24 = tpu.matmul %23, %9, %cst_8 {dimension_numbers = #tpu.dot_dimension_numbers<[1], [0], [0], [1], [0, 0, 1, 1], [], []>} : vector<16x16xbf16>, vector<16x128xbf16>, vector<16x128xf32> -> vector<16x128xf32>
    %25 = arith.truncf %24 : vector<16x128xf32> to vector<16x128xbf16>
    %c0_9 = arith.constant 0 : index
    %c0_10 = arith.constant 0 : index
    %26 = vector.load %arg4[%c0_9, %c0_10] : memref<16x128xbf16, #tpu.memory_space<vmem>>, vector<16x128xbf16>
    tpu.vector_store %arg4[%c0_9, %c0_10], %25 {strides = array<i32>} : memref<16x128xbf16, #tpu.memory_space<vmem>>, vector<16x128xbf16>,
    return
  }
  func.func @transform_0(%arg0: i32) -> (i32, i32) {
    %c0_i32 = arith.constant 0 : i32
    %c0_i32_0 = arith.constant 0 : i32
    %c0_i32_1 = arith.constant 0 : i32
    return %c0_i32, %c0_i32_0 : i32, i32
  }
  func.func @transform_1(%arg0: i32) -> (i32, i32) {
    %c0_i32 = arith.constant 0 : i32
    %c0_i32_0 = arith.constant 0 : i32
    %c0_i32_1 = arith.constant 0 : i32
    return %c0_i32, %c0_i32_0 : i32, i32
  }
  func.func @transform_2(%arg0: i32) -> (i32, i32) {
    %c0_i32 = arith.constant 0 : i32
    %c0_i32_0 = arith.constant 0 : i32
    %c0_i32_1 = arith.constant 0 : i32
    return %c0_i32, %c0_i32_0 : i32, i32
  }
  func.func @transform_3(%arg0: i32) -> (i32, i32) {
    %c0_i32 = arith.constant 0 : i32
    %c0_i32_0 = arith.constant 0 : i32
    %c0_i32_1 = arith.constant 0 : i32
    return %c0_i32, %c0_i32_0 : i32, i32
  }
}

</mosaic_0001>

<bundles_post_ra>
// kernel: head_forward.1
= control target key start
LH: loop header
LB: loop body
LE: loop exit
PB: predicated region body
PF: predicated region fallthrough
CT: control target
= control target key end

     0   :  { %8 = vsyncpa [#allocation3], 0  ;;  %s1267_s0 = inlined_call_operand.hbm [shape: f32[16,384], index: 0, kind: input, shape index: {}]   ;;  %s1268_s1 = inlined_call_operand.hbm [shape: bf16[384,384], index: 1, kind: input, shape index: {}]   ;;  %s1269_s2 = inlined_call_operand.hbm [shape: f32[16,16], index: 2, kind: input, shape index: {}]   ;;  %s1270_s3 = inlined_call_operand.vmem [shape: bf16[16,128], index: 3, kind: output, shape index: {}]  }
   0x1   :  { %9 = vsyncpa [#allocation5], 0  ;;  %s27_s14 = sshll.u32 %s1268_s1, 4  ;;  %s1206_s15 = smov [#allocation4]   ;;  %s28_s14 = int_to_ptr.hbm [resolvable:$true] %s27_s14 }
   0x2   :  { %s29_s16 = sshll.u32 %s1206_s15, 4  ;;  %s14_s19 = sshll.u32 %s1267_s0, 4  ;;  %s30_s16 = int_to_ptr.vmem [resolvable:$true] %s29_s16  ;;  %s15_s19 = int_to_ptr.hbm [resolvable:$true] %s14_s19 }
   0x3   :  { %s1207_s20 = smov 192   ;;  %s1208_s21 = smov 12  }
   0x4   :  { %35 = dma.hbm_to_vmem [thread:$0]  %s28_s14, 9216, %s30_s16, [#allocation5], %s1207_s20, %s1207_s20, %s1208_s21  }
   0x5   :  { %s1209_s22 = smov [#allocation2]   ;;  %s1210_s24 = smov 384  }
   0x6   :  { %s16_s23 = sshll.u32 %s1209_s22, 4  ;;  %s1211_s25 = smov 24   ;;  %s17_s23 = int_to_ptr.vmem [resolvable:$true] %s16_s23 }
   0x7   :  { %22 = dma.hbm_to_vmem [thread:$0]  %s15_s19, 768, %s17_s23, [#allocation3], %s1210_s24, %s1210_s24, %s1211_s25  }
   0x8   :  { %s40_s27 = sshll.u32 %s1269_s2, 4  ;;  %s1212_s28 = smov [#allocation6]   ;;  %s41_s27 = int_to_ptr.hbm [resolvable:$true] %s40_s27 }
   0x9   :  { %s42_s29 = sshll.u32 %s1212_s28, 4  ;;  %s1213_s30 = smov 128   ;;  %s43_s29 = int_to_ptr.vmem [resolvable:$true] %s42_s29 }
   0xa   :  { %s1214_s0 = smov 8  }
   0xb   :  { %48 = dma.hbm_to_vmem [thread:$0]  %s41_s27, 256, %s43_s29, [#allocation5], %s1213_s30, %s1213_s30, %s1214_s0  }
   0xc   :  { %1202 = dma.done.wait [#allocation3], 768  }
   0xd   :  { %1203 = vsyncadd [#allocation3], 4294966528 }
   0xe   :  { %1204 = dma.done.wait [#allocation5], 9472  }
   0xf   :  { %1205 = vsyncadd [#allocation5], 4294957824  ;;  %v833_v0 = vld [vmem:[#allocation4 + $0xa8] sm:$0xf]  ;;  %v1058_v1 = vld [vmem:[#allocation4 + $0xb0] sm:$0xf0] }
  0x10   :  { %v929_v2 = vld [vmem:[#allocation4 + $0x168] sm:$0xf]  ;;  %v834_v3 = vor.u32 %v1058_v1, %v833_v0  ;;  %v1082_v4 = vld [vmem:[#allocation4 + $0x170] sm:$0xf0]  ;;  %v821_v9 = vld [vmem:[#allocation4 + $0x90] sm:$0xf] }
  0x11   :  { %v1025_v5 = vld [vmem:[#allocation4 + $0x228] sm:$0xf]  ;;  %v1106_v6 = vld [vmem:[#allocation4 + $0x230] sm:$0xf0]  ;;  %v930_v7 = vor.u32 %v1082_v4, %v929_v2  ;;  %v1055_v10 = vld [vmem:[#allocation4 + $0x98] sm:$0xf0] }
  0x12   :  { %v1026_v8 = vor.u32 %v1106_v6, %v1025_v5  ;;  %v917_v11 = vld [vmem:[#allocation4 + $0x150] sm:$0xf]  ;;  %551 = vmatpush.bf16.msra.mxu0 %v834_v3  ;;  %v822_v12 = vor.u32 %v1055_v10, %v821_v9  ;;  %v1079_v13 = vld [vmem:[#allocation4 + $0x158] sm:$0xf0]  ;;  %v809_v18 = vld [vmem:[#allocation4 + $0x78] sm:$0xf] }
  0x13   :  { %v1013_v14 = vld [vmem:[#allocation4 + $0x210] sm:$0xf]  ;;  %v1103_v15 = vld [vmem:[#allocation4 + $0x218] sm:$0xf0]  ;;  %565 = vmatpush.bf16.msra.mxu1 %v930_v7  ;;  %v918_v16 = vor.u32 %v1079_v13, %v917_v11  ;;  %v1052_v19 = vld [vmem:[#allocation4 + $0x80] sm:$0xf0] }
  0x14   :  { %579 = vmatpush.bf16.msra.mxu2 %v1026_v8  ;;  %v1014_v17 = vor.u32 %v1103_v15, %v1013_v14  ;;  %v905_v20 = vld [vmem:[#allocation4 + $0x138] sm:$0xf]  ;;  %v1076_v21 = vld [vmem:[#allocation4 + $0x140] sm:$0xf0]  ;;  %v810_v24 = vor.u32 %v1052_v19, %v809_v18  ;;  %v797_v25 = vld [vmem:[#allocation4 + $0x60] sm:$0xf] }
  0x15   :  { %v1001_v22 = vld [vmem:[#allocation4 + $0x1f8] sm:$0xf]  ;;  %v1100_v23 = vld [vmem:[#allocation4 + $0x200] sm:$0xf0]  ;;  %v1049_v26 = vld [vmem:[#allocation4 + $0x68] sm:$0xf0]  ;;  %v906_v27 = vor.u32 %v1076_v21, %v905_v20 }
  0x16   :  { %552 = vmatpush.bf16.msra.mxu0 %v822_v12  ;;  %v1002_v28 = vor.u32 %v1100_v23, %v1001_v22  ;;  %v893_v29 = vld [vmem:[#allocation4 + $0x120] sm:$0xf]  ;;  %v1057_v30 = vld [vmem:[#allocation4 + $0xac] sm:$0xf]  ;;  %v835_v31 = vld [vmem:[#allocation4 + $0xb4] sm:$0xf0]  ;;  %v798_v37 = vor.u32 %v1049_v26, %v797_v25 }
  0x17   :  { %566 = vmatpush.bf16.msra.mxu1 %v918_v16  ;;  %v1073_v32 = vld [vmem:[#allocation4 + $0x128] sm:$0xf0]  ;;  %v989_v33 = vld [vmem:[#allocation4 + $0x1e0] sm:$0xf]  ;;  %v838_v35 = vor.u32 %v1057_v30, %v835_v31  ;;  %v1054_v36 = vld [vmem:[#allocation4 + $0x94] sm:$0xf] }
  0x18   :  { %580 = vmatpush.bf16.msra.mxu2 %v1014_v17  ;;  %v1097_v34 = vld [vmem:[#allocation4 + $0x1e8] sm:$0xf0]  ;;  %v785_v38 = vld [vmem:[#allocation4 + $0x48] sm:$0xf]  ;;  %v1046_v39 = vld [vmem:[#allocation4 + $0x50] sm:$0xf0]  ;;  %v894_v41 = vor.u32 %v1073_v32, %v893_v29 }
  0x19   :  { %593 = vmatpush.bf16.msra.mxu3 %v838_v35  ;;  %v823_v40 = vld [vmem:[#allocation4 + $0x9c] sm:$0xf0]  ;;  %v990_v42 = vor.u32 %v1097_v34, %v989_v33  ;;  %v881_v43 = vld [vmem:[#allocation4 + $0x108] sm:$0xf]  ;;  %v1070_v44 = vld [vmem:[#allocation4 + $0x110] sm:$0xf0]  ;;  %v786_v50 = vor.u32 %v1046_v39, %v785_v38 }
  0x1a   :  { %553 = vmatpush.bf16.msra.mxu0 %v810_v24  ;;  %v977_v45 = vld [vmem:[#allocation4 + $0x1c8] sm:$0xf]  ;;  %v826_v46 = vor.u32 %v1054_v36, %v823_v40  ;;  %v1094_v47 = vld [vmem:[#allocation4 + $0x1d0] sm:$0xf0]  ;;  %v1051_v48 = vld [vmem:[#allocation4 + $0x7c] sm:$0xf]  ;;  %v882_v54 = vor.u32 %v1070_v44, %v881_v43 }
  0x1b   :  { %567 = vmatpush.bf16.msra.mxu1 %v906_v27  ;;  %v811_v49 = vld [vmem:[#allocation4 + $0x84] sm:$0xf0]  ;;  %v773_v51 = vld [vmem:[#allocation4 + $0x30] sm:$0xf]  ;;  %v1043_v52 = vld [vmem:[#allocation4 + $0x38] sm:$0xf0]  ;;  %v978_v55 = vor.u32 %v1094_v47, %v977_v45 }
  0x1c   :  { %581 = vmatpush.bf16.msra.mxu2 %v1002_v28  ;;  %v814_v53 = vor.u32 %v1051_v48, %v811_v49  ;;  %v869_v56 = vld [vmem:[#allocation4 + $0xf0] sm:$0xf]  ;;  %v1048_v57 = vld [vmem:[#allocation4 + $0x64] sm:$0xf]  ;;  %v1067_v59 = vld [vmem:[#allocation4 + $0xf8] sm:$0xf0]  ;;  %v774_v62 = vor.u32 %v1043_v52, %v773_v51 }
  0x1d   :  { %594 = vmatpush.bf16.msra.mxu3 %v826_v46  ;;  %v799_v58 = vld [vmem:[#allocation4 + $0x6c] sm:$0xf0]  ;;  %v1091_v61 = vld [vmem:[#allocation4 + $0x1b8] sm:$0xf0]  ;;  %v761_v63 = vld [vmem:[#allocation4 + $0x18] sm:$0xf]  ;;  %v870_v2 = vor.u32 %v1067_v59, %v869_v56 }
  0x1e   :  { %554 = vmatpush.bf16.msra.mxu0 %v798_v37  ;;  %v965_v60 = vld [vmem:[#allocation4 + $0x1b0] sm:$0xf]  ;;  %v1040_v0 = vld [vmem:[#allocation4 + $0x20] sm:$0xf0]  ;;  %v802_v1 = vor.u32 %v1048_v57, %v799_v58  ;;  %v857_v4 = vld [vmem:[#allocation4 + $0xd8] sm:$0xf] }
  0x1f   :  { %568 = vmatpush.bf16.msra.mxu1 %v894_v41  ;;  %v966_v3 = vor.u32 %v1091_v61, %v965_v60  ;;  %v1045_v5 = vld [vmem:[#allocation4 + $0x4c] sm:$0xf]  ;;  %v787_v6 = vld [vmem:[#allocation4 + $0x54] sm:$0xf0]  ;;  %v1064_v7 = vld [vmem:[#allocation4 + $0xe0] sm:$0xf0]  ;;  %v762_v10 = vor.u32 %v1040_v0, %v761_v63 }
  0x20   :  { %582 = vmatpush.bf16.msra.mxu2 %v990_v42  ;;  %v953_v8 = vld [vmem:[#allocation4 + $0x198] sm:$0xf]  ;;  %v1088_v9 = vld [vmem:[#allocation4 + $0x1a0] sm:$0xf0]  ;;  %v749_v11 = vld [vmem:[#allocation4] sm:$0xf]  ;;  %v790_v14 = vor.u32 %v1045_v5, %v787_v6  ;;  %v858_v15 = vor.u32 %v1064_v7, %v857_v4 }
  0x21   :  { %595 = vmatpush.bf16.msra.mxu3 %v814_v53  ;;  %v1037_v12 = vld [vmem:[#allocation4 + $0x8] sm:$0xf0]  ;;  %v845_v13 = vld [vmem:[#allocation4 + $0xc0] sm:$0xf]  ;;  %v954_v16 = vor.u32 %v1088_v9, %v953_v8  ;;  %v1042_v18 = vld [vmem:[#allocation4 + $0x34] sm:$0xf] }
  0x22   :  { %555 = vmatpush.bf16.msra.mxu0 %v786_v50  ;;  %v1061_v17 = vld [vmem:[#allocation4 + $0xc8] sm:$0xf0]  ;;  %v775_v19 = vld [vmem:[#allocation4 + $0x3c] sm:$0xf0]  ;;  %v931_v23 = vld [vmem:[#allocation4 + $0x174] sm:$0xf0]  ;;  %v750_v26 = vor.u32 %v1037_v12, %v749_v11 }
  0x23   :  { %569 = vmatpush.bf16.msra.mxu1 %v882_v54  ;;  %v941_v20 = vld [vmem:[#allocation4 + $0x180] sm:$0xf]  ;;  %v1085_v21 = vld [vmem:[#allocation4 + $0x188] sm:$0xf0]  ;;  %v1027_v25 = vld [vmem:[#allocation4 + $0x234] sm:$0xf0]  ;;  %v778_v28 = vor.u32 %v1042_v18, %v775_v19  ;;  %v846_v31 = vor.u32 %v1061_v17, %v845_v13 }
  0x24   :  { %583 = vmatpush.bf16.msra.mxu2 %v978_v55  ;;  %v1081_v22 = vld [vmem:[#allocation4 + $0x16c] sm:$0xf]  ;;  %v64_v27 = vld [vmem:[#allocation2 + $0x10] sm:$0xff]  ;;  %v62_v29 = vld [vmem:[#allocation2] sm:$0xff]  ;;  %v942_v32 = vor.u32 %v1085_v21, %v941_v20  ;;  %vm696_vm0 = vcmask 130048  }
  0x25   :  { %596 = vmatpush.bf16.msra.mxu3 %v802_v1  ;;  %v1105_v24 = vld [vmem:[#allocation4 + $0x22c] sm:$0xf]  ;;  %v67_v33 = vld [vmem:[#allocation2 + $0x28] sm:$0xff]  ;;  %v66_v35 = vld [vmem:[#allocation2 + $0x20] sm:$0xff]  ;;  %v934_v36 = vor.u32 %v1081_v22, %v931_v23 }
  0x26   :  { %556 = vmatpush.bf16.msra.mxu0 %v774_v62  ;;  %v65_v30 = vld [vmem:[#allocation2 + $0x18] sm:$0xff]  ;;  %v63_v34 = vld [vmem:[#allocation2 + $0x8] sm:$0xff]  ;;  %v1030_v37 = vor.u32 %v1105_v24, %v1027_v25  ;;  %v1078_v38 = vld [vmem:[#allocation4 + $0x154] sm:$0xf]  ;;  %v1246_v45 = vpack.c.bf16 %v67_v33, %v64_v27 }
  0x27   :  { %570 = vmatpush.bf16.msra.mxu1 %v870_v2  ;;  %v1039_v39 = vld [vmem:[#allocation4 + $0x1c] sm:$0xf]  ;;  %v763_v40 = vld [vmem:[#allocation4 + $0x24] sm:$0xf0]  ;;  %v919_v41 = vld [vmem:[#allocation4 + $0x15c] sm:$0xf0]  ;;  %v1244_v44 = vpack.c.bf16 %v65_v30, %v62_v29  ;;  %v1248_v46 = vpack.c.bf16 %v66_v35, %v63_v34 }
  0x28   :  { %584 = vmatpush.bf16.msra.mxu2 %v966_v3  ;;  %v1102_v42 = vld [vmem:[#allocation4 + $0x214] sm:$0xf]  ;;  %v1015_v43 = vld [vmem:[#allocation4 + $0x21c] sm:$0xf0]  ;;  %v766_v47 = vor.u32 %v1039_v39, %v763_v40  ;;  %v922_v48 = vor.u32 %v1078_v38, %v919_v41  ;;  %v1075_v50 = vld [vmem:[#allocation4 + $0x13c] sm:$0xf] }
  0x29   :  { %597 = vmatpush.bf16.msra.mxu3 %v790_v14  ;;  %v1018_v49 = vor.u32 %v1102_v42, %v1015_v43  ;;  %v1036_v51 = vld [vmem:[#allocation4 + $0x4] sm:$0xf]  ;;  %v751_v52 = vld [vmem:[#allocation4 + $0xc] sm:$0xf0]  ;;  %v907_v53 = vld [vmem:[#allocation4 + $0x144] sm:$0xf0] }
  0x2a   :  { %557 = vmatpush.bf16.msra.mxu0 %v762_v10  ;;  %v1099_v54 = vld [vmem:[#allocation4 + $0x1fc] sm:$0xf]  ;;  %v1003_v55 = vld [vmem:[#allocation4 + $0x204] sm:$0xf0]  ;;  %v754_v56 = vor.u32 %v1036_v51, %v751_v52  ;;  %v910_v57 = vor.u32 %v1075_v50, %v907_v53  ;;  %v1072_v59 = vld [vmem:[#allocation4 + $0x124] sm:$0xf] }
  0x2b   :  { %571 = vmatpush.bf16.msra.mxu1 %v858_v15  ;;  %v1006_v58 = vor.u32 %v1099_v54, %v1003_v55  ;;  %v895_v60 = vld [vmem:[#allocation4 + $0x12c] sm:$0xf0]  ;;  %v1096_v61 = vld [vmem:[#allocation4 + $0x1e4] sm:$0xf]  ;;  %v1069_v1 = vld [vmem:[#allocation4 + $0x10c] sm:$0xf] }
  0x2c   :  { %585 = vmatpush.bf16.msra.mxu2 %v954_v16  ;;  %v991_v62 = vld [vmem:[#allocation4 + $0x1ec] sm:$0xf0]  ;;  %v898_v63 = vor.u32 %v1072_v59, %v895_v60  ;;  %v883_v2 = vld [vmem:[#allocation4 + $0x114] sm:$0xf0]  ;;  %v1093_v3 = vld [vmem:[#allocation4 + $0x1cc] sm:$0xf] }
  0x2d   :  { %598 = vmatpush.bf16.msra.mxu3 %v778_v28  ;;  %v994_v0 = vor.u32 %v1096_v61, %v991_v62  ;;  %v979_v4 = vld [vmem:[#allocation4 + $0x1d4] sm:$0xf0]  ;;  %v886_v5 = vor.u32 %v1069_v1, %v883_v2  ;;  %v1066_v7 = vld [vmem:[#allocation4 + $0xf4] sm:$0xf]  ;;  %v871_v8 = vld [vmem:[#allocation4 + $0xfc] sm:$0xf0] }
  0x2e   :  { %558 = vmatpush.bf16.msra.mxu0 %v750_v26  ;;  %v982_v6 = vor.u32 %v1093_v3, %v979_v4  ;;  %v1090_v9 = vld [vmem:[#allocation4 + $0x1b4] sm:$0xf]  ;;  %v967_v10 = vld [vmem:[#allocation4 + $0x1bc] sm:$0xf0]  ;;  %v874_v11 = vor.u32 %v1066_v7, %v871_v8  ;;  %v1063_v13 = vld [vmem:[#allocation4 + $0xdc] sm:$0xf] }
  0x2f   :  { %572 = vmatpush.bf16.msra.mxu1 %v846_v31  ;;  %v970_v12 = vor.u32 %v1090_v9, %v967_v10  ;;  %v859_v14 = vld [vmem:[#allocation4 + $0xe4] sm:$0xf0]  ;;  %v1087_v15 = vld [vmem:[#allocation4 + $0x19c] sm:$0xf]  ;;  %v1060_v19 = vld [vmem:[#allocation4 + $0xc4] sm:$0xf] }
  0x30   :  { %586 = vmatpush.bf16.msra.mxu2 %v942_v32  ;;  %v955_v16 = vld [vmem:[#allocation4 + $0x1a4] sm:$0xf0]  ;;  %v862_v17 = vor.u32 %v1063_v13, %v859_v14  ;;  %v847_v20 = vld [vmem:[#allocation4 + $0xcc] sm:$0xf0]  ;;  %v1084_v21 = vld [vmem:[#allocation4 + $0x184] sm:$0xf] }
  0x31   :  { %559 = vmatmul.bf16.vlgmr.msra.gmra.mxu0 %v1244_v44  ;;  %599 = vmatpush.bf16.msra.mxu3 %v766_v47  ;;  %v958_v18 = vor.u32 %v1087_v15, %v955_v16  ;;  %v943_v22 = vld [vmem:[#allocation4 + $0x18c] sm:$0xf0]  ;;  %v850_v23 = vor.u32 %v1060_v19, %v847_v20  ;;  %v1059_v51 = vld [vmem:[#allocation4 + $0xb8] sm:$0xf0]  ;;  %v829_v55 = vld [vmem:[#allocation4 + $0x98] sm:$0xf] }
  0x32   :  { %607 = vmatpush.bf16.msrb.mxu0 %v934_v36  ;;  %573 = vmatmul.bf16.vlgmr.msra.gmra.mxu1 %v1248_v46  ;;  %v946_v24 = vor.u32 %v1084_v21, %v943_v22  ;;  %v841_v50 = vld [vmem:[#allocation4 + $0xb0] sm:$0xf]  ;;  %v1083_v54 = vld [vmem:[#allocation4 + $0x178] sm:$0xf0]  ;;  %v1080_v59 = vld [vmem:[#allocation4 + $0x160] sm:$0xf0] }
  0x33   :  { %621 = vmatpush.bf16.msrb.mxu1 %v1030_v37  ;;  %587 = vmatmul.bf16.vlgmr.msra.gmra.mxu2 %v1246_v45  ;;  %v937_v52 = vld [vmem:[#allocation4 + $0x170] sm:$0xf]  ;;  %v842_v53 = vor.u32 %v1059_v51, %v841_v50  ;;  %v817_v61 = vld [vmem:[#allocation4 + $0x80] sm:$0xf]  ;;  %v1107_v1 = vld [vmem:[#allocation4 + $0x238] sm:$0xf0] }
  0x34   :  { %v913_v2 = vld [vmem:[#allocation4 + $0x140] sm:$0xf]  ;;  %v1077_v3 = vld [vmem:[#allocation4 + $0x148] sm:$0xf0]  ;;  %v805_v8 = vld [vmem:[#allocation4 + $0x68] sm:$0xf] }
  0x35   :  { %600 = vmatpush.bf16.msra.mxu3 %v754_v56  ;;  %v1056_v56 = vld [vmem:[#allocation4 + $0xa0] sm:$0xf0]  ;;  %635 = vmatpush.bf16.msrb.mxu2 %v842_v53  ;;  %v914_v10 = vor.u32 %v1077_v3, %v913_v2  ;;  %v1101_v13 = vld [vmem:[#allocation4 + $0x208] sm:$0xf0]  ;;  %v901_v14 = vld [vmem:[#allocation4 + $0x128] sm:$0xf] }
  0x36   :  { %608 = vmatpush.bf16.msrb.mxu0 %v922_v48  ;;  %v830_v60 = vor.u32 %v1056_v56, %v829_v55  ;;  %v1074_v15 = vld [vmem:[#allocation4 + $0x130] sm:$0xf0]  ;;  %v1047_v20 = vld [vmem:[#allocation4 + $0x58] sm:$0xf0]  ;;  %v997_v21 = vld [vmem:[#allocation4 + $0x1e8] sm:$0xf] }
  0x37   :  { %622 = vmatpush.bf16.msrb.mxu1 %v1018_v49  ;;  %v902_v19 = vor.u32 %v1074_v15, %v901_v14  ;;  %v1098_v22 = vld [vmem:[#allocation4 + $0x1f0] sm:$0xf0]  ;;  %v757_v51 = vld [vmem:[#allocation4 + $0x8] sm:$0xf]  ;;  %v961_v55 = vld [vmem:[#allocation4 + $0x1a0] sm:$0xf] }
  0x38   :  { %601 = vmatmul.bf16.vlgmr.msra.gmra.mxu3 %v1244_v44  ;;  %v1089_v56 = vld [vmem:[#allocation4 + $0x1a8] sm:$0xf0] }
  0x39   :  { %636 = vmatpush.bf16.msrb.mxu2 %v830_v60 }
  0x3a   :  { %609 = vmatpush.bf16.msrb.mxu0 %v910_v57  ;;  %v938_v57 = vor.u32 %v1083_v54, %v937_v52  ;;  %v1038_v54 = vld [vmem:[#allocation4 + $0x10] sm:$0xf0] }
  0x3b   :  { %623 = vmatpush.bf16.msrb.mxu1 %v1006_v58  ;;  %v925_v58 = vld [vmem:[#allocation4 + $0x158] sm:$0xf]  ;;  %v758_v60 = vor.u32 %v1038_v54, %v757_v51 }
  0x3c   :  { %649 = vmatpush.bf16.msrb.mxu3 %v938_v57  ;;  %v926_v62 = vor.u32 %v1080_v59, %v925_v58  ;;  %v853_v57 = vld [vmem:[#allocation4 + $0xc8] sm:$0xf]  ;;  %v1062_v58 = vld [vmem:[#allocation4 + $0xd0] sm:$0xf0] }
  0x3d   :  { %v681_v59 = vld [vmem:[#allocation6 + $0x8] sm:$0xff] }
  0x3e   :  { %610 = vmatpush.bf16.msrb.mxu0 %v898_v63  ;;  %v1053_v63 = vld [vmem:[#allocation4 + $0x88] sm:$0xf0] }
  0x3f   :  { %624 = vmatpush.bf16.msrb.mxu1 %v994_v0  ;;  %v1033_v0 = vld [vmem:[#allocation4 + $0x230] sm:$0xf]  ;;  %v818_v7 = vor.u32 %v1053_v63, %v817_v61  ;;  %v962_v61 = vor.u32 %v1089_v56, %v961_v55  ;;  %v854_v63 = vor.u32 %v1062_v58, %v853_v57 }
  0x40   :  { %v1034_v4 = vor.u32 %v1107_v1, %v1033_v0  ;;  %650 = vmatpush.bf16.msrb.mxu3 %v926_v62  ;;  %v949_v0 = vld [vmem:[#allocation4 + $0x188] sm:$0xf]  ;;  %v1086_v1 = vld [vmem:[#allocation4 + $0x190] sm:$0xf0] }
  0x41   :  { %637 = vmatpush.bf16.msrb.mxu2 %v818_v7 }
  0x42   :  { %611 = vmatpush.bf16.msrb.mxu0 %v886_v5  ;;  %v1021_v5 = vld [vmem:[#allocation4 + $0x218] sm:$0xf] }
  0x43   :  { %625 = vmatpush.bf16.msrb.mxu1 %v982_v6  ;;  %v1104_v6 = vld [vmem:[#allocation4 + $0x220] sm:$0xf0] }
  0x44   :  { %v1022_v9 = vor.u32 %v1104_v6, %v1021_v5  ;;  %651 = vmatpush.bf16.msrb.mxu3 %v914_v10 }
  0x46   :  { %612 = vmatpush.bf16.msrb.mxu0 %v874_v11  ;;  %v1050_v11 = vld [vmem:[#allocation4 + $0x70] sm:$0xf0] }
  0x47   :  { %626 = vmatpush.bf16.msrb.mxu1 %v970_v12  ;;  %v1009_v12 = vld [vmem:[#allocation4 + $0x200] sm:$0xf]  ;;  %v806_v16 = vor.u32 %v1050_v11, %v805_v8 }
  0x48   :  { %652 = vmatpush.bf16.msrb.mxu3 %v902_v19 }
  0x49   :  { %638 = vmatpush.bf16.msrb.mxu2 %v806_v16 }
  0x4a   :  { %613 = vmatpush.bf16.msrb.mxu0 %v862_v17  ;;  %v793_v17 = vld [vmem:[#allocation4 + $0x50] sm:$0xf] }
  0x4b   :  { %627 = vmatpush.bf16.msrb.mxu1 %v958_v18  ;;  %v1010_v18 = vor.u32 %v1101_v13, %v1009_v12 }
  0x4e   :  { %614 = vmatpush.bf16.msrb.mxu0 %v850_v23  ;;  %v889_v23 = vld [vmem:[#allocation4 + $0x110] sm:$0xf] }
  0x4f   :  { %628 = vmatpush.bf16.msrb.mxu1 %v946_v24  ;;  %v1071_v24 = vld [vmem:[#allocation4 + $0x118] sm:$0xf0] }
  0x51   :  { %615 = vmatmul.bf16.vlgmr.msrb.gmra.mxu0 %v1248_v46 }
  0x52   :  { %629 = vmatmul.bf16.vlgmr.msrb.gmra.mxu1 %v1246_v45  ;;  %663 = vmatpush.bf16.msra.mxu0 %v1034_v4  ;;  %v950_v4 = vor.u32 %v1086_v1, %v949_v0 }
  0x56   :  { %664 = vmatpush.bf16.msra.mxu0 %v1022_v9 }
  0x5a   :  { %665 = vmatpush.bf16.msra.mxu0 %v1010_v18 }
  0xae   :  { %v560_v25 = vpop.f32.mrf.mxu0 }
  0xaf   :  { %v574_v26 = vpop.f32.mrf.mxu1 }
  0xb0   :  { %v575_v40 = vadd.f32 %v574_v26, %v560_v25  ;;  %v794_v25 = vor.u32 %v1047_v20, %v793_v17  ;;  %v781_v26 = vld [vmem:[#allocation4 + $0x38] sm:$0xf] }
  0xb2   :  { %639 = vmatpush.bf16.msrb.mxu2 %v794_v25 }
  0xb6   :  { %v562_v27 = vpop.f32.mrf.mxu0  ;;  %v588_v32 = vpop.f32.mrf.mxu2 }
  0xb7   :  { %v576_v28 = vpop.f32.mrf.mxu1  ;;  %v589_v47 = vadd.f32 %v588_v32, %v575_v40  ;;  %v877_v32 = vld [vmem:[#allocation4 + $0xf8] sm:$0xf]  ;;  %v1041_v40 = vld [vmem:[#allocation4 + $0x28] sm:$0xf0] }
  0xb8   :  { %v577_v41 = vadd.f32 %v576_v28, %v562_v27  ;;  %v998_v27 = vor.u32 %v1098_v22, %v997_v21  ;;  %v890_v28 = vor.u32 %v1071_v24, %v889_v23 }
  0xba   :  { %666 = vmatpush.bf16.msra.mxu0 %v998_v27  ;;  %653 = vmatpush.bf16.msrb.mxu3 %v890_v28 }
  0xbb   :  { %v602_v29 = vpop.f32.mrf.mxu3 }
  0xbe   :  { %v590_v42 = vpop.f32.mrf.mxu2 }
  0xbf   :  { %v591_v48 = vadd.f32 %v590_v42, %v577_v41  ;;  %v973_v41 = vld [vmem:[#allocation4 + $0x1b8] sm:$0xf]  ;;  %v1092_v42 = vld [vmem:[#allocation4 + $0x1c0] sm:$0xf0] }
  0xc0   :  { %v974_v52 = vor.u32 %v1092_v42, %v973_v41 }
  0xc1   :  { %v677_v49 = vpack.c.bf16 %v591_v48, %v589_v47  ;;  %v865_v47 = vld [vmem:[#allocation4 + $0xe0] sm:$0xf]  ;;  %v1065_v48 = vld [vmem:[#allocation4 + $0xe8] sm:$0xf0] }
  0xc2   :  { %v866_v53 = vor.u32 %v1065_v48, %v865_v47 }
  0xc3   :  { %v604_v34 = vpop.f32.mrf.mxu3 }
  0xce   :  { %v616_v30 = vpop.f32.mrf.mxu0 }
  0xcf   :  { %v630_v31 = vpop.f32.mrf.mxu1  ;;  %v617_v33 = vadd.f32 %v616_v30, %v602_v29  ;;  %v1044_v29 = vld [vmem:[#allocation4 + $0x40] sm:$0xf0]  ;;  %v985_v30 = vld [vmem:[#allocation4 + $0x1d0] sm:$0xf] }
  0xd1   :  { %v631_v38 = vadd.f32 %v630_v31, %v617_v33  ;;  %v1095_v31 = vld [vmem:[#allocation4 + $0x1d8] sm:$0xf0]  ;;  %v1068_v33 = vld [vmem:[#allocation4 + $0x100] sm:$0xf0] }
  0xd6   :  { %v618_v35 = vpop.f32.mrf.mxu0 }
  0xd7   :  { %v619_v36 = vadd.f32 %v618_v35, %v604_v34  ;;  %v632_v37 = vpop.f32.mrf.mxu1  ;;  %v680_v34 = vld [vmem:[#allocation6] sm:$0xff]  ;;  %v782_v35 = vor.u32 %v1044_v29, %v781_v26 }
  0xd9   :  { %v633_v39 = vadd.f32 %v632_v37, %v619_v36  ;;  %v769_v36 = vld [vmem:[#allocation4 + $0x20] sm:$0xf]  ;;  %v986_v37 = vor.u32 %v1095_v31, %v985_v30  ;;  %640 = vmatpush.bf16.msrb.mxu2 %v782_v35 }
  0xda   :  { %v770_v50 = vor.u32 %v1041_v40, %v769_v36 }
  0xdb   :  { %v678_v43 = vpack.c.bf16 %v633_v39, %v631_v38  ;;  %v878_v39 = vor.u32 %v1068_v33, %v877_v32  ;;  %667 = vmatpush.bf16.msra.mxu0 %v986_v37 }
  0xdd   :  { %689 = vmatpush.bf16.xpose.msra.mxu1 %v678_v43  ;;  %654 = vmatpush.bf16.msrb.mxu3 %v878_v39 }
  0xde   :  { %641 = vmatpush.bf16.msrb.mxu2 %v770_v50 }
  0xdf   :  { %668 = vmatpush.bf16.msra.mxu0 %v974_v52 }
  0xe1   :  { %655 = vmatpush.bf16.msrb.mxu3 %v866_v53 }
  0xe2   :  { %642 = vmatpush.bf16.msrb.mxu2 %v758_v60 }
  0xe3   :  { %669 = vmatpush.bf16.msra.mxu0 %v962_v61 }
  0xe4   :  { %690 = vmatmul.bf16.vlgmr.msra.gmra.mxu1 %v677_v49 }
  0xe5   :  { %656 = vmatpush.bf16.msrb.mxu3 %v854_v63  ;;  %643 = vmatmul.bf16.vlgmr.msrb.gmra.mxu2 %v1244_v44 }
  0xe7   :  { %670 = vmatpush.bf16.msra.mxu0 %v950_v4 }
  0xe8   :  { %657 = vmatmul.bf16.vlgmr.msrb.gmra.mxu3 %v1248_v46 }
  0xea   :  { %671 = vmatmul.bf16.vlgmr.msra.gmra.mxu0 %v1246_v45 }
 0x161   :  { %v691_v38 = vpop.f32.mrf.mxu1 }
 0x162   :  { %v692_v43 = vadd.f32 %v691_v38, %v680_v34 }
 0x164   :  { %v697_v49 = vsel %vm696_vm0, %v692_v43, -inf }
 0x165   :  { %698 = vmax.xlane.f32.xlu0 %v697_v49 }
 0x167   :  { %v672_v46 = vpop.f32.mrf.mxu0 }
 0x168   :  { %v644_v14 = vpop.f32.mrf.mxu2 }
 0x169   :  { %v693_v62 = vpop.f32.mrf.mxu1 }
 0x16a   :  { %v694_v2 = vadd.f32 %v693_v62, %v681_v59 }
 0x16b   :  { %v658_v15 = vpop.f32.mrf.mxu3 }
 0x16c   :  { %v700_v3 = vsel %vm696_vm0, %v694_v2, -inf  ;;  %v659_v45 = vadd.f32 %v658_v15, %v644_v14 }
 0x16d   :  { %701 = vmax.xlane.f32.xlu0 %v700_v3 }
 0x16e   :  { %v673_v19 = vadd.f32 %v672_v46, %v659_v45 }
 0x16f   :  { %v674_v18 = vpop.f32.mrf.mxu0 }
 0x170   :  { %v646_v16 = vpop.f32.mrf.mxu2 }
 0x173   :  { %v660_v17 = vpop.f32.mrf.mxu3 }
 0x174   :  { %v661_v20 = vadd.f32 %v660_v17, %v646_v16 }
 0x176   :  { %v675_v21 = vadd.f32 %v674_v18, %v661_v20 }
 0x178   :  { %v679_v22 = vpack.c.bf16 %v675_v21, %v673_v19 }
 0x17a   :  { %730 = vmatpush.bf16.msra.mxu2 %v679_v22 }
 0x1d8   :  { %v699_v5 = vpop.xlane.xlu0 %698 }
 0x1d9   :  { %v703_v6 = vsub.f32 %v692_v43, %v699_v5 }
 0x1db   :  { %v705_v7 = vmul.f32 1.442695, %v703_v6 }
 0x1dd   :  { %1122 = vpow2.f32 %v705_v7 }
 0x1e0   :  { %v702_v8 = vpop.xlane.xlu0 %701 }
 0x1e1   :  { %v704_v9 = vsub.f32 %v694_v2, %v702_v8 }
 0x1e3   :  { %v1123_v10 = vpop.eup %1122  ;;  %v707_v11 = vmul.f32 1.442695, %v704_v9 }
 0x1e4   :  { %v709_v12 = vsel %vm696_vm0, %v1123_v10, 0.0 }
 0x1e5   :  { %1124 = vpow2.f32 %v707_v11  ;;  %710 = vadd.xlane.f32.xlu1 %v709_v12 }
 0x1eb   :  { %v1125_v13 = vpop.eup %1124 }
 0x1ec   :  { %v712_v44 = vsel %vm696_vm0, %v1125_v13, 0.0 }
 0x1ed   :  { %713 = vadd.xlane.f32.xlu1 %v712_v44 }
 0x258   :  { %v711_v23 = vpop.xlane.xlu1 %710 }
 0x259   :  { %1126 = vrcp.f32 %v711_v23 }
 0x25f   :  { %v1127_v25 = vpop.eup %1126 }
 0x260   :  { %v714_v24 = vpop.xlane.xlu1 %713  ;;  %v717_v27 = vmul.f32 %v1127_v25, %v1123_v10 }
 0x261   :  { %1128 = vrcp.f32 %v714_v24 }
 0x267   :  { %v1129_v26 = vpop.eup %1128 }
 0x268   :  { %v718_v28 = vmul.f32 %v1129_v26, %v1125_v13 }
 0x26a   :  { %v719_v29 = vpack.c.bf16 %v718_v28, %v717_v27 }
 0x26c   :  { %1035 = vmatmul.msk.bf16.vlgmr.msra.gmra.mxu2 %vm696_vm0, %v719_v29 }
 0x2ef   :  { %v732_v30 = vpop.f32.mrf.mxu2 }
 0x2f7   :  { %v734_v31 = vpop.f32.mrf.mxu2 }
 0x2f8   :  { %v1111_v32 = vpack.c.bf16 %v734_v31, %v732_v30 }
 0x2fa   :  { %1112 = vst [vmem:[%s1270_s3] sm:$0xff] %v1111_v32  }
 0x2fb   :  { %745 = vsyncpa [#allocation3], 1 }
 0x2fc   :  { %746 = vsyncpa [#allocation5], 1 }

</bundles_post_ra>
